<compile_context>
chip_gen: v7x
topology: tpu7x:2x2x1
jax: 0.10.0
libtpu: 0.0.40
codegen_flags: <defaults>
</compile_context>

<pallas_src>
import math

import jax
import jax.numpy as jnp
from jax.experimental import pallas as pl
from jax.experimental.pallas import tpu as pltpu

LOG_SIG_MAX = 2.0
LOG_SIG_MIN = -20.0

_LANE = 128
_SUBLANE = 8


def _round_up(x, m):
    return ((x + m - 1) // m) * m


# ---------------------------------------------------------------------------
# Kernel
# ---------------------------------------------------------------------------
def gaussian_policy_kernel(
    x_ref,                # (TB, num_inputs) streamed state tile (caller dtype)
    w1_ref, b1_ref,
    w2_ref, b2_ref,
    w3_ref, b3_ref,
    wh_ref, bh_ref,       # fused head: [wm | wl] padded to 128 lanes
    lo_ref, hi_ref,       # (1, n_pad) per-lane clamp bounds
    out_ref,              # (TB, n_pad) fused [mean | log_std | zero-pad]
):
    dt = w1_ref.dtype
    # Cast in-kernel: the HBM copy of the state stays in the caller's dtype.
    x = x_ref[...].astype(dt)

    # linear1 + relu (f32 accumulation, f32 bias/ReLU)
    h = jnp.dot(x, w1_ref[...], preferred_element_type=jnp.float32) + b1_ref[...]
    h = jnp.maximum(h, 0.0)

    # linear2 + relu
    h = jnp.dot(h.astype(dt), w2_ref[...], preferred_element_type=jnp.float32) + b2_ref[...]
    h = jnp.maximum(h, 0.0)

    # linear3 + relu
    h = jnp.dot(h.astype(dt), w3_ref[...], preferred_element_type=jnp.float32) + b3_ref[...]
    h = jnp.maximum(h, 0.0)

    # fused mean / log_std head: one wide matmul + one lane-dense store
    head = jnp.dot(h.astype(dt), wh_ref[...], preferred_element_type=jnp.float32) + bh_ref[...]

    # per-lane clamp: -inf/+inf on mean lanes (no-op), LOG_SIG_MIN/MAX on
    # log_std lanes — 2 broadcast VPU ops instead of iota + compares + select.
    head = jnp.minimum(jnp.maximum(head, lo_ref[...]), hi_ref[...])

    out_ref[...] = head.astype(out_ref.dtype)


# ---------------------------------------------------------------------------
# Param preparation: fuse heads, pad hidden/head dims to lane multiples,
# build per-lane clamp rows, cast matmul inputs (default bf16, f32 accumulate).
# ---------------------------------------------------------------------------
def prepare_params(params, matmul_dtype=jnp.bfloat16):
    num_inputs, hidden = params["w1"].shape
    num_actions = params["wm"].shape[1]

    h_pad = _round_up(hidden, _LANE)
    n_pad = _round_up(2 * num_actions, _LANE)

    def pad2(a, rows, cols):
        return jnp.pad(a, ((0, rows - a.shape[0]), (0, cols - a.shape[1])))

    wh = jnp.concatenate([params["wm"], params["wl"]], axis=1)
    bh = jnp.concatenate([params["bm"], params["bl"]], axis=1)

    lane = jnp.arange(n_pad)
    is_log_std = (lane >= num_actions) & (lane < 2 * num_actions)
    lo = jnp.where(is_log_std, jnp.float32(LOG_SIG_MIN), jnp.float32(-jnp.inf))[None, :]
    hi = jnp.where(is_log_std, jnp.float32(LOG_SIG_MAX), jnp.float32(jnp.inf))[None, :]

    # TODO(synk): optional fp8 weights for w2/w3 on v7x if accuracy budget allows.
    return {
        # w1 keeps K = num_inputs (no row pad) so the state needs no K-dim pad.
        "w1": pad2(params["w1"], num_inputs, h_pad).astype(matmul_dtype),
        "b1": pad2(params["b1"], 1, h_pad).astype(jnp.float32),
        "w2": pad2(params["w2"], h_pad, h_pad).astype(matmul_dtype),
        "b2": pad2(params["b2"], 1, h_pad).astype(jnp.float32),
        "w3": pad2(params["w3"], h_pad, h_pad).astype(matmul_dtype),
        "b3": pad2(params["b3"], 1, h_pad).astype(jnp.float32),
        "wh": pad2(wh, h_pad, n_pad).astype(matmul_dtype),
        "bh": pad2(bh, 1, n_pad).astype(jnp.float32),
        "lo": lo.astype(jnp.float32),
        "hi": hi.astype(jnp.float32),
    }


# ---------------------------------------------------------------------------
# Forward wrapper
# ---------------------------------------------------------------------------
def gaussian_policy_forward(state, prepared, *, num_actions, block_batch=1024,
                            single_buffer_weights=True, out_dtype=jnp.float32):
    batch, num_inputs = state.shape
    h_pad = prepared["w2"].shape[0]
    n_pad = prepared["wh"].shape[1]

    # Batch tile: multiple of 8 sublanes; force >= 2 grid steps when batch > 8
    # so the "parallel" batch axis can use both v7x TensorCores.
    if batch <= _SUBLANE:
        tb = batch                                    # block == full dim: legal
    else:
        tb = min(_round_up(block_batch, _SUBLANE),
                 _round_up(pl.cdiv(batch, 2), _SUBLANE))
    grid = (pl.cdiv(batch, tb),)                      # ragged last tile handled by Pallas

    def resident(shape):
        idx = lambda i: (0,) * len(shape)
        if single_buffer_weights:
            try:
                # constant index_map -> no re-DMA; Buffered(1) also halves VMEM
                return pl.BlockSpec(shape, idx, pipeline_mode=pl.Buffered(1))
            except (AttributeError, TypeError):
                pass
        return pl.BlockSpec(shape, idx)

    out = pl.pallas_call(
        gaussian_policy_kernel,
        out_shape=jax.ShapeDtypeStruct((batch, n_pad), out_dtype),
        grid=grid,
        in_specs=[
            pl.BlockSpec((tb, num_inputs), lambda i: (i, 0)),   # streamed state tile
            resident((num_inputs, h_pad)),                      # resident weights/biases
            resident((1, h_pad)),
            resident((h_pad, h_pad)),
            resident((1, h_pad)),
            resident((h_pad, h_pad)),
            resident((1, h_pad)),
            resident((h_pad, n_pad)),
            resident((1, n_pad)),
            resident((1, n_pad)),                               # lo
            resident((1, n_pad)),                               # hi
        ],
        out_specs=pl.BlockSpec((tb, n_pad), lambda i: (i, 0)),
        compiler_params=pltpu.CompilerParams(
            dimension_semantics=("parallel",),
        ),
    )(
        state,
        prepared["w1"], prepared["b1"],
        prepared["w2"], prepared["b2"],
        prepared["w3"], prepared["b3"],
        prepared["wh"], prepared["bh"],
        prepared["lo"], prepared["hi"],
    )

    mean = out[:, :num_actions].astype(jnp.float32)
    log_std = out[:, num_actions:2 * num_actions].astype(jnp.float32)
    return mean, log_std


# ---------------------------------------------------------------------------
# Init + pure-JAX reference
# ---------------------------------------------------------------------------
def xavier_uniform(key, fan_in, fan_out, dtype=jnp.float32):
    # torch.nn.init.xavier_uniform_ with gain=1
    limit = math.sqrt(6.0 / (fan_in + fan_out))
    return jax.random.uniform(key, (fan_in, fan_out), dtype=dtype, minval=-limit, maxval=limit)


def init_params(key, num_inputs, num_actions, hidden_dim):
    keys = jax.random.split(key, 5)
    return {
        "w1": xavier_uniform(keys[0], num_inputs, hidden_dim),
        "b1": jnp.zeros((1, hidden_dim), jnp.float32),
        "w2": xavier_uniform(keys[1], hidden_dim, hidden_dim),
        "b2": jnp.zeros((1, hidden_dim), jnp.float32),
        "w3": xavier_uniform(keys[2], hidden_dim, hidden_dim),
        "b3": jnp.zeros((1, hidden_dim), jnp.float32),
        "wm": xavier_uniform(keys[3], hidden_dim, num_actions),
        "bm": jnp.zeros((1, num_actions), jnp.float32),
        "wl": xavier_uniform(keys[4], hidden_dim, num_actions),
        "bl": jnp.zeros((1, num_actions), jnp.float32),
    }


def reference_forward(state, params):
    h = jnp.maximum(state @ params["w1"] + params["b1"], 0.0)
    h = jnp.maximum(h @ params["w2"] + params["b2"], 0.0)
    h = jnp.maximum(h @ params["w3"] + params["b3"], 0.0)
    mean = h @ params["wm"] + params["bm"]
    log_std = jnp.clip(h @ params["wl"] + params["bl"], LOG_SIG_MIN, LOG_SIG_MAX)
    return mean, log_std


if __name__ == "__main__":
    batch = 8
    num_inputs = 16
    num_actions = 8
    hidden_dim = 32

    key = jax.random.PRNGKey(0)
    key_params, key_state, key_state2 = jax.random.split(key, 3)

    params = init_params(key_params, num_inputs, num_actions, hidden_dim)
    state = jax.random.normal(key_state, (batch, num_inputs), dtype=jnp.float32)

    fwd = jax.jit(
        gaussian_policy_forward,
        static_argnames=("num_actions", "block_batch", "single_buffer_weights", "out_dtype"),
    )

    def run(state_arr, prepared, **kw):
        # Safety net: if this JAX build rejects single-buffered resident weights
        # (pipeline_mode=pl.Buffered(1)), retry with default double buffering.
        try:
            out = fwd(state_arr, prepared, **kw)
            jax.block_until_ready(out)
            return out
        except Exception:
            out = fwd(state_arr, prepared, single_buffer_weights=False, **kw)
            jax.block_until_ready(out)
            return out

    ref_mean, ref_log_std = reference_forward(state, params)

    # --- f32 matmul path (exact forward semantics) ---
    prepared_f32 = prepare_params(params, matmul_dtype=jnp.float32)
    mean, log_std = run(state, prepared_f32, num_actions=num_actions)
    assert mean.shape == (batch, num_actions)
    assert log_std.shape == (batch, num_actions)
    assert jnp.allclose(mean, ref_mean, atol=1e-5, rtol=1e-5)
    assert jnp.allclose(log_std, ref_log_std, atol=1e-5, rtol=1e-5)

    # --- larger, non-tile-multiple batch: exercises the >=2-step ragged grid ---
    big_batch = 300
    state_big = jax.random.normal(key_state2, (big_batch, num_inputs), dtype=jnp.float32)
    mean_b, log_std_b = run(state_big, prepared_f32, num_actions=num_actions)
    ref_mean_b, ref_log_std_b = reference_forward(state_big, params)
    assert mean_b.shape == (big_batch, num_actions)
    assert jnp.allclose(mean_b, ref_mean_b, atol=1e-4, rtol=1e-4)
    assert jnp.allclose(log_std_b, ref_log_std_b, atol=1e-4, rtol=1e-4)

    # --- default bf16 matmul-input path (f32 accumulation), loose tolerance ---
    prepared_bf16 = prepare_params(params)
    mean_h, log_std_h = run(state, prepared_bf16, num_actions=num_actions)
    assert float(jnp.max(jnp.abs(mean_h - ref_mean))) < 0.25
    assert float(jnp.max(jnp.abs(log_std_h - ref_log_std))) < 0.25

    # TODO(synk): GaussianPolicy.sample() (rsample + tanh squash + log_prob) is
    # stochastic glue around forward(); forward() is the hot path implemented here.
    print("KERNEL_OK")
</pallas_src>

<mosaic_0001>
module attributes {stable_mosaic.version = 11 : i64} {
  func.func @gaussian_policy_kernel(%arg0: i32, %arg1: memref<8x16xf32, #tpu.memory_space<vmem>>, %arg2: memref<16x128xf32, #tpu.memory_space<vmem>>, %arg3: memref<1x128xf32, #tpu.memory_space<vmem>>, %arg4: memref<128x128xf32, #tpu.memory_space<vmem>>, %arg5: memref<1x128xf32, #tpu.memory_space<vmem>>, %arg6: memref<128x128xf32, #tpu.memory_space<vmem>>, %arg7: memref<1x128xf32, #tpu.memory_space<vmem>>, %arg8: memref<128x128xf32, #tpu.memory_space<vmem>>, %arg9: memref<1x128xf32, #tpu.memory_space<vmem>>, %arg10: memref<1x128xf32, #tpu.memory_space<vmem>>, %arg11: memref<1x128xf32, #tpu.memory_space<vmem>>, %arg12: memref<8x128xf32, #tpu.memory_space<vmem>>) attributes {dimension_semantics = [#tpu.dimension_semantics<parallel>], iteration_bounds = array<i64: 1>, scalar_prefetch = 0 : i64, scratch_operands = 0 : i64, tpu.core_type = #tpu.core_type<tc>, window_params = [{transform_indices = @transform_0, window_bounds = array<i64: 8, 16>}, {pipeline_mode = #tpu.pipeline_mode<synchronous>, transform_indices = @transform_1, window_bounds = array<i64: 16, 128>}, {pipeline_mode = #tpu.pipeline_mode<synchronous>, transform_indices = @transform_2, window_bounds = array<i64: 1, 128>}, {pipeline_mode = #tpu.pipeline_mode<synchronous>, transform_indices = @transform_3, window_bounds = array<i64: 128, 128>}, {pipeline_mode = #tpu.pipeline_mode<synchronous>, transform_indices = @transform_4, window_bounds = array<i64: 1, 128>}, {pipeline_mode = #tpu.pipeline_mode<synchronous>, transform_indices = @transform_5, window_bounds = array<i64: 128, 128>}, {pipeline_mode = #tpu.pipeline_mode<synchronous>, transform_indices = @transform_6, window_bounds = array<i64: 1, 128>}, {pipeline_mode = #tpu.pipeline_mode<synchronous>, transform_indices = @transform_7, window_bounds = array<i64: 128, 128>}, {pipeline_mode = #tpu.pipeline_mode<synchronous>, transform_indices = @transform_8, window_bounds = array<i64: 1, 128>}, {pipeline_mode = #tpu.pipeline_mode<synchronous>, transform_indices = @transform_9, window_bounds = array<i64: 1, 128>}, {pipeline_mode = #tpu.pipeline_mode<synchronous>, transform_indices = @transform_10, window_bounds = array<i64: 1, 128>}, {transform_indices = @transform_11, window_bounds = array<i64: 8, 128>}]} {
    %c0 = arith.constant 0 : index
    %c0_0 = arith.constant 0 : index
    %0 = vector.load %arg1[%c0, %c0_0] : memref<8x16xf32, #tpu.memory_space<vmem>>, vector<8x16xf32>
    %c0_1 = arith.constant 0 : index
    %c0_2 = arith.constant 0 : index
    %1 = vector.load %arg2[%c0_1, %c0_2] : memref<16x128xf32, #tpu.memory_space<vmem>>, vector<16x128xf32>
    %cst = arith.constant dense<0.000000e+00> : vector<8x128xf32>
    %2 = tpu.matmul %0, %1, %cst {dimension_numbers = #tpu.dot_dimension_numbers<[1], [0], [0], [1], [0, 0, 1, 1], [], []>} : vector<8x16xf32>, vector<16x128xf32>, vector<8x128xf32> -> vector<8x128xf32>
    %c0_3 = arith.constant 0 : index
    %c0_4 = arith.constant 0 : index
    %3 = vector.load %arg3[%c0_3, %c0_4] : memref<1x128xf32, #tpu.memory_space<vmem>>, vector<1x128xf32>
    %4 = vector.broadcast %3 : vector<1x128xf32> to vector<8x128xf32>
    %5 = arith.addf %2, %4 : vector<8x128xf32>
    %cst_5 = arith.constant 0.000000e+00 : f32
    %6 = vector.broadcast %cst_5 : f32 to vector<8x128xf32>
    %7 = arith.maximumf %5, %6 : vector<8x128xf32>
    %c0_6 = arith.constant 0 : index
    %c0_7 = arith.constant 0 : index
    %8 = vector.load %arg4[%c0_6, %c0_7] : memref<128x128xf32, #tpu.memory_space<vmem>>, vector<128x128xf32>
    %cst_8 = arith.constant dense<0.000000e+00> : vector<8x128xf32>
    %9 = tpu.matmul %7, %8, %cst_8 {dimension_numbers = #tpu.dot_dimension_numbers<[1], [0], [0], [1], [0, 0, 1, 1], [], []>} : vector<8x128xf32>, vector<128x128xf32>, vector<8x128xf32> -> vector<8x128xf32>
    %c0_9 = arith.constant 0 : index
    %c0_10 = arith.constant 0 : index
    %10 = vector.load %arg5[%c0_9, %c0_10] : memref<1x128xf32, #tpu.memory_space<vmem>>, vector<1x128xf32>
    %11 = vector.broadcast %10 : vector<1x128xf32> to vector<8x128xf32>
    %12 = arith.addf %9, %11 : vector<8x128xf32>
    %cst_11 = arith.constant 0.000000e+00 : f32
    %13 = vector.broadcast %cst_11 : f32 to vector<8x128xf32>
    %14 = arith.maximumf %12, %13 : vector<8x128xf32>
    %c0_12 = arith.constant 0 : index
    %c0_13 = arith.constant 0 : index
    %15 = vector.load %arg6[%c0_12, %c0_13] : memref<128x128xf32, #tpu.memory_space<vmem>>, vector<128x128xf32>
    %cst_14 = arith.constant dense<0.000000e+00> : vector<8x128xf32>
    %16 = tpu.matmul %14, %15, %cst_14 {dimension_numbers = #tpu.dot_dimension_numbers<[1], [0], [0], [1], [0, 0, 1, 1], [], []>} : vector<8x128xf32>, vector<128x128xf32>, vector<8x128xf32> -> vector<8x128xf32>
    %c0_15 = arith.constant 0 : index
    %c0_16 = arith.constant 0 : index
    %17 = vector.load %arg7[%c0_15, %c0_16] : memref<1x128xf32, #tpu.memory_space<vmem>>, vector<1x128xf32>
    %18 = vector.broadcast %17 : vector<1x128xf32> to vector<8x128xf32>
    %19 = arith.addf %16, %18 : vector<8x128xf32>
    %cst_17 = arith.constant 0.000000e+00 : f32
    %20 = vector.broadcast %cst_17 : f32 to vector<8x128xf32>
    %21 = arith.maximumf %19, %20 : vector<8x128xf32>
    %c0_18 = arith.constant 0 : index
    %c0_19 = arith.constant 0 : index
    %22 = vector.load %arg8[%c0_18, %c0_19] : memref<128x128xf32, #tpu.memory_space<vmem>>, vector<128x128xf32>
    %cst_20 = arith.constant dense<0.000000e+00> : vector<8x128xf32>
    %23 = tpu.matmul %21, %22, %cst_20 {dimension_numbers = #tpu.dot_dimension_numbers<[1], [0], [0], [1], [0, 0, 1, 1], [], []>} : vector<8x128xf32>, vector<128x128xf32>, vector<8x128xf32> -> vector<8x128xf32>
    %c0_21 = arith.constant 0 : index
    %c0_22 = arith.constant 0 : index
    %24 = vector.load %arg9[%c0_21, %c0_22] : memref<1x128xf32, #tpu.memory_space<vmem>>, vector<1x128xf32>
    %25 = vector.broadcast %24 : vector<1x128xf32> to vector<8x128xf32>
    %26 = arith.addf %23, %25 : vector<8x128xf32>
    %c0_23 = arith.constant 0 : index
    %c0_24 = arith.constant 0 : index
    %27 = vector.load %arg10[%c0_23, %c0_24] : memref<1x128xf32, #tpu.memory_space<vmem>>, vector<1x128xf32>
    %28 = vector.broadcast %27 : vector<1x128xf32> to vector<8x128xf32>
    %29 = arith.maximumf %26, %28 : vector<8x128xf32>
    %c0_25 = arith.constant 0 : index
    %c0_26 = arith.constant 0 : index
    %30 = vector.load %arg11[%c0_25, %c0_26] : memref<1x128xf32, #tpu.memory_space<vmem>>, vector<1x128xf32>
    %31 = vector.broadcast %30 : vector<1x128xf32> to vector<8x128xf32>
    %32 = arith.minimumf %29, %31 : vector<8x128xf32>
    %c0_27 = arith.constant 0 : index
    %c0_28 = arith.constant 0 : index
    %33 = vector.load %arg12[%c0_27, %c0_28] : memref<8x128xf32, #tpu.memory_space<vmem>>, vector<8x128xf32>
    tpu.vector_store %arg12[%c0_27, %c0_28], %32 {strides = array<i32>} : memref<8x128xf32, #tpu.memory_space<vmem>>, vector<8x128xf32>,
    return
  }
  func.func @transform_0(%arg0: i32) -> (i32, i32) {
    %c0_i32 = arith.constant 0 : i32
    %c0_i32_0 = arith.constant 0 : i32
    return %arg0, %c0_i32 : i32, i32
  }
  func.func @transform_1(%arg0: i32) -> (i32, i32) {
    %c0_i32 = arith.constant 0 : i32
    %c0_i32_0 = arith.constant 0 : i32
    %c0_i32_1 = arith.constant 0 : i32
    return %c0_i32, %c0_i32_0 : i32, i32
  }
  func.func @transform_2(%arg0: i32) -> (i32, i32) {
    %c0_i32 = arith.constant 0 : i32
    %c0_i32_0 = arith.constant 0 : i32
    %c0_i32_1 = arith.constant 0 : i32
    return %c0_i32, %c0_i32_0 : i32, i32
  }
  func.func @transform_3(%arg0: i32) -> (i32, i32) {
    %c0_i32 = arith.constant 0 : i32
    %c0_i32_0 = arith.constant 0 : i32
    %c0_i32_1 = arith.constant 0 : i32
    return %c0_i32, %c0_i32_0 : i32, i32
  }
  func.func @transform_4(%arg0: i32) -> (i32, i32) {
    %c0_i32 = arith.constant 0 : i32
    %c0_i32_0 = arith.constant 0 : i32
    %c0_i32_1 = arith.constant 0 : i32
    return %c0_i32, %c0_i32_0 : i32, i32
  }
  func.func @transform_5(%arg0: i32) -> (i32, i32) {
    %c0_i32 = arith.constant 0 : i32
    %c0_i32_0 = arith.constant 0 : i32
    %c0_i32_1 = arith.constant 0 : i32
    return %c0_i32, %c0_i32_0 : i32, i32
  }
  func.func @transform_6(%arg0: i32) -> (i32, i32) {
    %c0_i32 = arith.constant 0 : i32
    %c0_i32_0 = arith.constant 0 : i32
    %c0_i32_1 = arith.constant 0 : i32
    return %c0_i32, %c0_i32_0 : i32, i32
  }
  func.func @transform_7(%arg0: i32) -> (i32, i32) {
    %c0_i32 = arith.constant 0 : i32
    %c0_i32_0 = arith.constant 0 : i32
    %c0_i32_1 = arith.constant 0 : i32
    return %c0_i32, %c0_i32_0 : i32, i32
  }
  func.func @transform_8(%arg0: i32) -> (i32, i32) {
    %c0_i32 = arith.constant 0 : i32
    %c0_i32_0 = arith.constant 0 : i32
    %c0_i32_1 = arith.constant 0 : i32
    return %c0_i32, %c0_i32_0 : i32, i32
  }
  func.func @transform_9(%arg0: i32) -> (i32, i32) {
    %c0_i32 = arith.constant 0 : i32
    %c0_i32_0 = arith.constant 0 : i32
    %c0_i32_1 = arith.constant 0 : i32
    return %c0_i32, %c0_i32_0 : i32, i32
  }
  func.func @transform_10(%arg0: i32) -> (i32, i32) {
    %c0_i32 = arith.constant 0 : i32
    %c0_i32_0 = arith.constant 0 : i32
    %c0_i32_1 = arith.constant 0 : i32
    return %c0_i32, %c0_i32_0 : i32, i32
  }
  func.func @transform_11(%arg0: i32) -> (i32, i32) {
    %c0_i32 = arith.constant 0 : i32
    %c0_i32_0 = arith.constant 0 : i32
    return %arg0, %c0_i32 : i32, i32
  }
}

module attributes {stable_mosaic.version = 11 : i64} {
  func.func @gaussian_policy_kernel(%arg0: i32, %arg1: memref<8x16xf32, #tpu.memory_space<vmem>>, %arg2: memref<16x128xf32, #tpu.memory_space<vmem>>, %arg3: memref<1x128xf32, #tpu.memory_space<vmem>>, %arg4: memref<128x128xf32, #tpu.memory_space<vmem>>, %arg5: memref<1x128xf32, #tpu.memory_space<vmem>>, %arg6: memref<128x128xf32, #tpu.memory_space<vmem>>, %arg7: memref<1x128xf32, #tpu.memory_space<vmem>>, %arg8: memref<128x128xf32, #tpu.memory_space<vmem>>, %arg9: memref<1x128xf32, #tpu.memory_space<vmem>>, %arg10: memref<1x128xf32, #tpu.memory_space<vmem>>, %arg11: memref<1x128xf32, #tpu.memory_space<vmem>>, %arg12: memref<8x128xf32, #tpu.memory_space<vmem>>) attributes {dimension_semantics = [#tpu.dimension_semantics<parallel>], iteration_bounds = array<i64: 1>, scalar_prefetch = 0 : i64, scratch_operands = 0 : i64, tpu.core_type = #tpu.core_type<tc>, window_params = [{transform_indices = @transform_0, window_bounds = array<i64: 8, 16>}, {pipeline_mode = #tpu.pipeline_mode<synchronous>, transform_indices = @transform_1, window_bounds = array<i64: 16, 128>}, {pipeline_mode = #tpu.pipeline_mode<synchronous>, transform_indices = @transform_2, window_bounds = array<i64: 1, 128>}, {pipeline_mode = #tpu.pipeline_mode<synchronous>, transform_indices = @transform_3, window_bounds = array<i64: 128, 128>}, {pipeline_mode = #tpu.pipeline_mode<synchronous>, transform_indices = @transform_4, window_bounds = array<i64: 1, 128>}, {pipeline_mode = #tpu.pipeline_mode<synchronous>, transform_indices = @transform_5, window_bounds = array<i64: 128, 128>}, {pipeline_mode = #tpu.pipeline_mode<synchronous>, transform_indices = @transform_6, window_bounds = array<i64: 1, 128>}, {pipeline_mode = #tpu.pipeline_mode<synchronous>, transform_indices = @transform_7, window_bounds = array<i64: 128, 128>}, {pipeline_mode = #tpu.pipeline_mode<synchronous>, transform_indices = @transform_8, window_bounds = array<i64: 1, 128>}, {pipeline_mode = #tpu.pipeline_mode<synchronous>, transform_indices = @transform_9, window_bounds = array<i64: 1, 128>}, {pipeline_mode = #tpu.pipeline_mode<synchronous>, transform_indices = @transform_10, window_bounds = array<i64: 1, 128>}, {transform_indices = @transform_11, window_bounds = array<i64: 8, 128>}]} {
    %c0 = arith.constant 0 : index
    %c0_0 = arith.constant 0 : index
    %0 = vector.load %arg1[%c0, %c0_0] : memref<8x16xf32, #tpu.memory_space<vmem>>, vector<8x16xf32>
    %c0_1 = arith.constant 0 : index
    %c0_2 = arith.constant 0 : index
    %1 = vector.load %arg2[%c0_1, %c0_2] : memref<16x128xf32, #tpu.memory_space<vmem>>, vector<16x128xf32>
    %cst = arith.constant dense<0.000000e+00> : vector<8x128xf32>
    %2 = tpu.matmul %0, %1, %cst {dimension_numbers = #tpu.dot_dimension_numbers<[1], [0], [0], [1], [0, 0, 1, 1], [], []>} : vector<8x16xf32>, vector<16x128xf32>, vector<8x128xf32> -> vector<8x128xf32>
    %c0_3 = arith.constant 0 : index
    %c0_4 = arith.constant 0 : index
    %3 = vector.load %arg3[%c0_3, %c0_4] : memref<1x128xf32, #tpu.memory_space<vmem>>, vector<1x128xf32>
    %4 = vector.broadcast %3 : vector<1x128xf32> to vector<8x128xf32>
    %5 = arith.addf %2, %4 : vector<8x128xf32>
    %cst_5 = arith.constant 0.000000e+00 : f32
    %6 = vector.broadcast %cst_5 : f32 to vector<8x128xf32>
    %7 = arith.maximumf %5, %6 : vector<8x128xf32>
    %c0_6 = arith.constant 0 : index
    %c0_7 = arith.constant 0 : index
    %8 = vector.load %arg4[%c0_6, %c0_7] : memref<128x128xf32, #tpu.memory_space<vmem>>, vector<128x128xf32>
    %cst_8 = arith.constant dense<0.000000e+00> : vector<8x128xf32>
    %9 = tpu.matmul %7, %8, %cst_8 {dimension_numbers = #tpu.dot_dimension_numbers<[1], [0], [0], [1], [0, 0, 1, 1], [], []>} : vector<8x128xf32>, vector<128x128xf32>, vector<8x128xf32> -> vector<8x128xf32>
    %c0_9 = arith.constant 0 : index
    %c0_10 = arith.constant 0 : index
    %10 = vector.load %arg5[%c0_9, %c0_10] : memref<1x128xf32, #tpu.memory_space<vmem>>, vector<1x128xf32>
    %11 = vector.broadcast %10 : vector<1x128xf32> to vector<8x128xf32>
    %12 = arith.addf %9, %11 : vector<8x128xf32>
    %cst_11 = arith.constant 0.000000e+00 : f32
    %13 = vector.broadcast %cst_11 : f32 to vector<8x128xf32>
    %14 = arith.maximumf %12, %13 : vector<8x128xf32>
    %c0_12 = arith.constant 0 : index
    %c0_13 = arith.constant 0 : index
    %15 = vector.load %arg6[%c0_12, %c0_13] : memref<128x128xf32, #tpu.memory_space<vmem>>, vector<128x128xf32>
    %cst_14 = arith.constant dense<0.000000e+00> : vector<8x128xf32>
    %16 = tpu.matmul %14, %15, %cst_14 {dimension_numbers = #tpu.dot_dimension_numbers<[1], [0], [0], [1], [0, 0, 1, 1], [], []>} : vector<8x128xf32>, vector<128x128xf32>, vector<8x128xf32> -> vector<8x128xf32>
    %c0_15 = arith.constant 0 : index
    %c0_16 = arith.constant 0 : index
    %17 = vector.load %arg7[%c0_15, %c0_16] : memref<1x128xf32, #tpu.memory_space<vmem>>, vector<1x128xf32>
    %18 = vector.broadcast %17 : vector<1x128xf32> to vector<8x128xf32>
    %19 = arith.addf %16, %18 : vector<8x128xf32>
    %cst_17 = arith.constant 0.000000e+00 : f32
    %20 = vector.broadcast %cst_17 : f32 to vector<8x128xf32>
    %21 = arith.maximumf %19, %20 : vector<8x128xf32>
    %c0_18 = arith.constant 0 : index
    %c0_19 = arith.constant 0 : index
    %22 = vector.load %arg8[%c0_18, %c0_19] : memref<128x128xf32, #tpu.memory_space<vmem>>, vector<128x128xf32>
    %cst_20 = arith.constant dense<0.000000e+00> : vector<8x128xf32>
    %23 = tpu.matmul %21, %22, %cst_20 {dimension_numbers = #tpu.dot_dimension_numbers<[1], [0], [0], [1], [0, 0, 1, 1], [], []>} : vector<8x128xf32>, vector<128x128xf32>, vector<8x128xf32> -> vector<8x128xf32>
    %c0_21 = arith.constant 0 : index
    %c0_22 = arith.constant 0 : index
    %24 = vector.load %arg9[%c0_21, %c0_22] : memref<1x128xf32, #tpu.memory_space<vmem>>, vector<1x128xf32>
    %25 = vector.broadcast %24 : vector<1x128xf32> to vector<8x128xf32>
    %26 = arith.addf %23, %25 : vector<8x128xf32>
    %c0_23 = arith.constant 0 : index
    %c0_24 = arith.constant 0 : index
    %27 = vector.load %arg10[%c0_23, %c0_24] : memref<1x128xf32, #tpu.memory_space<vmem>>, vector<1x128xf32>
    %28 = vector.broadcast %27 : vector<1x128xf32> to vector<8x128xf32>
    %29 = arith.maximumf %26, %28 : vector<8x128xf32>
    %c0_25 = arith.constant 0 : index
    %c0_26 = arith.constant 0 : index
    %30 = vector.load %arg11[%c0_25, %c0_26] : memref<1x128xf32, #tpu.memory_space<vmem>>, vector<1x128xf32>
    %31 = vector.broadcast %30 : vector<1x128xf32> to vector<8x128xf32>
    %32 = arith.minimumf %29, %31 : vector<8x128xf32>
    %c0_27 = arith.constant 0 : index
    %c0_28 = arith.constant 0 : index
    %33 = vector.load %arg12[%c0_27, %c0_28] : memref<8x128xf32, #tpu.memory_space<vmem>>, vector<8x128xf32>
    tpu.vector_store %arg12[%c0_27, %c0_28], %32 {strides = array<i32>} : memref<8x128xf32, #tpu.memory_space<vmem>>, vector<8x128xf32>,
    return
  }
  func.func @transform_0(%arg0: i32) -> (i32, i32) {
    %c0_i32 = arith.constant 0 : i32
    %c0_i32_0 = arith.constant 0 : i32
    return %arg0, %c0_i32 : i32, i32
  }
  func.func @transform_1(%arg0: i32) -> (i32, i32) {
    %c0_i32 = arith.constant 0 : i32
    %c0_i32_0 = arith.constant 0 : i32
    %c0_i32_1 = arith.constant 0 : i32
    return %c0_i32, %c0_i32_0 : i32, i32
  }
  func.func @transform_2(%arg0: i32) -> (i32, i32) {
    %c0_i32 = arith.constant 0 : i32
    %c0_i32_0 = arith.constant 0 : i32
    %c0_i32_1 = arith.constant 0 : i32
    return %c0_i32, %c0_i32_0 : i32, i32
  }
  func.func @transform_3(%arg0: i32) -> (i32, i32) {
    %c0_i32 = arith.constant 0 : i32
    %c0_i32_0 = arith.constant 0 : i32
    %c0_i32_1 = arith.constant 0 : i32
    return %c0_i32, %c0_i32_0 : i32, i32
  }
  func.func @transform_4(%arg0: i32) -> (i32, i32) {
    %c0_i32 = arith.constant 0 : i32
    %c0_i32_0 = arith.constant 0 : i32
    %c0_i32_1 = arith.constant 0 : i32
    return %c0_i32, %c0_i32_0 : i32, i32
  }
  func.func @transform_5(%arg0: i32) -> (i32, i32) {
    %c0_i32 = arith.constant 0 : i32
    %c0_i32_0 = arith.constant 0 : i32
    %c0_i32_1 = arith.constant 0 : i32
    return %c0_i32, %c0_i32_0 : i32, i32
  }
  func.func @transform_6(%arg0: i32) -> (i32, i32) {
    %c0_i32 = arith.constant 0 : i32
    %c0_i32_0 = arith.constant 0 : i32
    %c0_i32_1 = arith.constant 0 : i32
    return %c0_i32, %c0_i32_0 : i32, i32
  }
  func.func @transform_7(%arg0: i32) -> (i32, i32) {
    %c0_i32 = arith.constant 0 : i32
    %c0_i32_0 = arith.constant 0 : i32
    %c0_i32_1 = arith.constant 0 : i32
    return %c0_i32, %c0_i32_0 : i32, i32
  }
  func.func @transform_8(%arg0: i32) -> (i32, i32) {
    %c0_i32 = arith.constant 0 : i32
    %c0_i32_0 = arith.constant 0 : i32
    %c0_i32_1 = arith.constant 0 : i32
    return %c0_i32, %c0_i32_0 : i32, i32
  }
  func.func @transform_9(%arg0: i32) -> (i32, i32) {
    %c0_i32 = arith.constant 0 : i32
    %c0_i32_0 = arith.constant 0 : i32
    %c0_i32_1 = arith.constant 0 : i32
    return %c0_i32, %c0_i32_0 : i32, i32
  }
  func.func @transform_10(%arg0: i32) -> (i32, i32) {
    %c0_i32 = arith.constant 0 : i32
    %c0_i32_0 = arith.constant 0 : i32
    %c0_i32_1 = arith.constant 0 : i32
    return %c0_i32, %c0_i32_0 : i32, i32
  }
  func.func @transform_11(%arg0: i32) -> (i32, i32) {
    %c0_i32 = arith.constant 0 : i32
    %c0_i32_0 = arith.constant 0 : i32
    return %arg0, %c0_i32 : i32, i32
  }
}

</mosaic_0001>

<bundles_post_ra>
// kernel: gaussian_policy_forward.1
= control target key start
LH: loop header
LB: loop body
LE: loop exit
PB: predicated region body
PF: predicated region fallthrough
CT: control target
= control target key end

     0   :  { %16 = vsyncpa [#allocation3], 0  ;;  %s1018_s0 = inlined_call_operand.hbm [shape: f32[8,16], index: 0, kind: input, shape index: {}]   ;;  %s1019_s1 = inlined_call_operand.vmem [shape: f32[16,128], index: 1, kind: input, shape index: {}]   ;;  %s1020_s2 = inlined_call_operand.vmem [shape: f32[1,128], index: 2, kind: input, shape index: {}]   ;;  %s1021_s3 = inlined_call_operand.hbm [shape: f32[128,128], index: 3, kind: input, shape index: {}]   ;;  %s1022_s4 = inlined_call_operand.vmem [shape: f32[1,128], index: 4, kind: input, shape index: {}]   ;;  %s1023_s5 = inlined_call_operand.hbm [shape: f32[128,128], index: 5, kind: input, shape index: {}]   ;;  %s1024_s6 = inlined_call_operand.vmem [shape: f32[1,128], index: 6, kind: input, shape index: {}]   ;;  %s1025_s7 = inlined_call_operand.hbm [shape: f32[128,128], index: 7, kind: input, shape index: {}]   ;;  %s1026_s8 = inlined_call_operand.vmem [shape: f32[1,128], index: 8, kind: input, shape index: {}]   ;;  %s1027_s9 = inlined_call_operand.vmem [shape: f32[1,128], index: 9, kind: input, shape index: {}]   ;;  %s1028_s10 = inlined_call_operand.vmem [shape: f32[1,128], index: 10, kind: input, shape index: {}]   ;;  %s1029_s11 = inlined_call_operand.vmem [shape: f32[8,128], index: 11, kind: output, shape index: {}]  }
   0x1   :  { %17 = vsyncpa [#allocation5], 0 }
   0x2   :  { %18 = vsyncpa [#allocation8], 0  ;;  %s832_s17 = smov [#allocation4]   ;;  %s738_s21 = scalar_lea.hbm %s1021_s3, 2048 }
   0x3   :  { %s38_s18 = sshll.u32 %s832_s17, 4  ;;  %p739_p0 = scmp.ne.s32.totalorder %s1021_s3, %s738_s21  ;;  %s39_s18 = int_to_ptr.vmem [resolvable:$true] %s38_s18 }
   0x4   :  { %p742_p1 = scmp.lt.u32.totalorder %s738_s21, %s1021_s3 }
   0x6   :  { %p744_p2 = pnand %p742_p1, %p739_p0 }
   0x8   :  { %747 = shalt.err (!%p744_p2)
}
   0x9   :  { %s748_s26 = scalar_lea.vmem %s39_s18, 2048  ;;  %p753_p4 = scmp.lt.s32.totalorder %s39_s18, %s39_s18 }
   0xa   :  { %p749_p3 = scmp.ne.s32.totalorder %s39_s18, %s748_s26  ;;  %p754_p5 = scmp.lt.s32.totalorder %s748_s26, %s748_s26 }
   0xc   :  { %p755_p6 = por %p754_p5, %p753_p4 }
   0xe   :  { %p756_p7 = pnand %p755_p6, %p749_p3 }
  0x10   :  { %759 = shalt.err (!%p756_p7)
}
  0x11   :  { %s833_s27 = smov 128   ;;  %s834_s28 = smov 8  }
  0x12   :  { %44 = dma.hbm_to_vmem [thread:$0]  %s1021_s3, 2048, %s39_s18, [#allocation5], %s833_s27, %s833_s27, %s834_s28  }
  0x13   :  { %s835_s12 = smov [#allocation2]   ;;  %s836_s14 = smov [#allocation6]  }
  0x14   :  { %s25_s13 = sshll.u32 %s835_s12, 4  ;;  %s52_s15 = sshll.u32 %s836_s14, 4  ;;  %s26_s13 = int_to_ptr.vmem [resolvable:$true] %s25_s13  ;;  %s53_s15 = int_to_ptr.vmem [resolvable:$true] %s52_s15 }
  0x15   :  { %s760_s19 = scalar_lea.hbm %s1018_s0, 128 }
  0x16   :  { %p761_p8 = scmp.ne.s32.totalorder %s1018_s0, %s760_s19  ;;  %p764_p9 = scmp.lt.u32.totalorder %s760_s19, %s1018_s0 }
  0x18   :  { %p766_p10 = pnand %p764_p9, %p761_p8 }
  0x1a   :  { %769 = shalt.err (!%p766_p10)
}
  0x1b   :  { %s770_s3 = scalar_lea.vmem %s26_s13, 128  ;;  %p775_p12 = scmp.lt.s32.totalorder %s26_s13, %s26_s13 }
  0x1c   :  { %p771_p11 = scmp.ne.s32.totalorder %s26_s13, %s770_s3  ;;  %p776_p13 = scmp.lt.s32.totalorder %s770_s3, %s770_s3 }
  0x1e   :  { %p777_p0 = por %p776_p13, %p775_p12 }
  0x20   :  { %p778_p1 = pnand %p777_p0, %p771_p11 }
  0x22   :  { %781 = shalt.err (!%p778_p1)
}
  0x23   :  { %28 = dma.hbm_to_vmem [thread:$0]  %s1018_s0, 128, %s26_s13, [#allocation3]  }
  0x24   :  { %s782_s29 = scalar_lea.hbm %s1023_s5, 2048 }
  0x25   :  { %p783_p2 = scmp.ne.s32.totalorder %s1023_s5, %s782_s29  ;;  %p786_p3 = scmp.lt.u32.totalorder %s782_s29, %s1023_s5 }
  0x27   :  { %p788_p4 = pnand %p786_p3, %p783_p2 }
  0x29   :  { %791 = shalt.err (!%p788_p4)
}
  0x2a   :  { %s792_s17 = scalar_lea.vmem %s53_s15, 2048  ;;  %p797_p6 = scmp.lt.s32.totalorder %s53_s15, %s53_s15 }
  0x2b   :  { %p793_p5 = scmp.ne.s32.totalorder %s53_s15, %s792_s17  ;;  %p798_p7 = scmp.lt.s32.totalorder %s792_s17, %s792_s17 }
  0x2d   :  { %p799_p8 = por %p798_p7, %p797_p6 }
  0x2f   :  { %p800_p9 = pnand %p799_p8, %p793_p5 }
  0x31   :  { %803 = shalt.err (!%p800_p9)
}
  0x32   :  { %58 = dma.hbm_to_vmem [thread:$0]  %s1023_s5, 2048, %s53_s15, [#allocation5], %s833_s27, %s833_s27, %s834_s28  }
  0x33   :  { %s837_s19 = smov [#allocation7]   ;;  %s804_s23 = scalar_lea.hbm %s1025_s7, 2048 }
  0x34   :  { %s66_s20 = sshll.u32 %s837_s19, 4  ;;  %p805_p10 = scmp.ne.s32.totalorder %s1025_s7, %s804_s23  ;;  %s67_s20 = int_to_ptr.vmem [resolvable:$true] %s66_s20 }
  0x35   :  { %p808_p11 = scmp.lt.u32.totalorder %s804_s23, %s1025_s7 }
  0x37   :  { %p810_p12 = pnand %p808_p11, %p805_p10 }
  0x39   :  { %813 = shalt.err (!%p810_p12)
}
  0x3a   :  { %s814_s26 = scalar_lea.vmem %s67_s20, 2048  ;;  %p819_p0 = scmp.lt.s32.totalorder %s67_s20, %s67_s20 }
  0x3b   :  { %p815_p13 = scmp.ne.s32.totalorder %s67_s20, %s814_s26  ;;  %p820_p1 = scmp.lt.s32.totalorder %s814_s26, %s814_s26 }
  0x3d   :  { %p821_p2 = por %p820_p1, %p819_p0 }
  0x3f   :  { %p822_p3 = pnand %p821_p2, %p815_p13 }
  0x41   :  { %825 = shalt.err (!%p822_p3)
}
  0x42   :  { %72 = dma.hbm_to_vmem [thread:$0]  %s1025_s7, 2048, %s67_s20, [#allocation8], %s833_s27, %s833_s27, %s834_s28  }
  0x43   :  { %826 = dma.done.wait [#allocation3], 128  }
  0x44   :  { %827 = vsyncadd [#allocation3], 4294967168 }
  0x45   :  { %828 = dma.done.wait [#allocation5], 4096  }
  0x46   :  { %829 = vsyncadd [#allocation5], 4294963200 }
  0x47   :  { %830 = dma.done.wait [#allocation8], 2048  }
  0x48   :  { %831 = vsyncadd [#allocation8], 4294965248  ;;  %v838_v0 = vmov 0.0|0.0   ;;  %vm839_vm0 = vmmov 0   ;;  %v840_v1 = vmov 0.0   ;;  %v92_v2 = vld [vmem:[%s1019_s1] sm:$0xff] }
  0x49   :  { %654 = vmatprep.subr.bf16.mxu0 %v838_v0  ;;  %546 = vmatprep.mubr.msk.f32.mxu0 %vm839_vm0, %v840_v1  ;;  %v93_v3 = vld [vmem:[%s1019_s1 + $0x8] sm:$0xff]  ;;  %v176_v5 = vld [vmem:[#allocation4] sm:$0xff]  ;;  %v178_v7 = vld [vmem:[#allocation4 + $0x10] sm:$0xff]  ;;  %vm101_vm1 = vcmask 130048  }
  0x4a   :  { %657 = vmatprep.subr.bf16.mxu1 %v838_v0  ;;  %581 = vmatprep.mubr.msk.f32.mxu1 %vm839_vm0, %v840_v1  ;;  %v655_v4 = vpack.c.bf16 %v93_v3, %v92_v2  ;;  %v177_v6 = vld [vmem:[#allocation4 + $0x8] sm:$0xff]  ;;  %v179_v9 = vld [vmem:[#allocation4 + $0x18] sm:$0xff]  ;;  %v180_v12 = vld [vmem:[#allocation4 + $0x20] sm:$0xff] }
  0x4b   :  { %v658_v8 = vpack.c.bf16 %v177_v6, %v176_v5  ;;  %v91_v10 = vld [vmem:[#allocation2] sm:$0xff]  ;;  %v661_v11 = vpack.c.bf16 %v179_v9, %v178_v7  ;;  %v181_v13 = vld [vmem:[#allocation4 + $0x28] sm:$0xff]  ;;  %v182_v15 = vld [vmem:[#allocation4 + $0x30] sm:$0xff] }
  0x4c   :  { %656 = vmatpush3.bf16.msra.mxu0 %v655_v4  ;;  %v664_v14 = vpack.c.bf16 %v181_v13, %v180_v12  ;;  %v183_v16 = vld [vmem:[#allocation4 + $0x38] sm:$0xff]  ;;  %v184_v18 = vld [vmem:[#allocation4 + $0x40] sm:$0xff]  ;;  %v185_v19 = vld [vmem:[#allocation4 + $0x48] sm:$0xff] }
  0x4d   :  { %659 = vmatpush3.bf16.msra.mxu1 %v658_v8  ;;  %681 = vmatprep.subr.bf16.mxu0 %v838_v0  ;;  %v667_v17 = vpack.c.bf16 %v183_v16, %v182_v15  ;;  %v670_v20 = vpack.c.bf16 %v185_v19, %v184_v18  ;;  %v186_v21 = vld [vmem:[#allocation4 + $0x50] sm:$0xff]  ;;  %v187_v22 = vld [vmem:[#allocation4 + $0x58] sm:$0xff]  ;;  %v188_v24 = vld [vmem:[#allocation4 + $0x60] sm:$0xff] }
  0x4e   :  { %660 = vmatprep.subr.bf16.mxu1 %v838_v0  ;;  %v673_v23 = vpack.c.bf16 %v187_v22, %v186_v21  ;;  %v189_v25 = vld [vmem:[#allocation4 + $0x68] sm:$0xff]  ;;  %v190_v27 = vld [vmem:[#allocation4 + $0x70] sm:$0xff]  ;;  %v191_v28 = vld [vmem:[#allocation4 + $0x78] sm:$0xff] }
  0x4f   :  { %547 = vmatmul.mubr.msk.f32.vlgmr.msra.gmra.mrb[0].mxu0 %vm101_vm1, %v91_v10  ;;  %v676_v26 = vpack.c.bf16 %v189_v25, %v188_v24  ;;  %v679_v29 = vpack.c.bf16 %v191_v28, %v190_v27  ;;  %v270_v30 = vld [vmem:[#allocation6] sm:$0xff]  ;;  %v271_v31 = vld [vmem:[#allocation6 + $0x8] sm:$0xff]  ;;  %v272_v32 = vld [vmem:[#allocation6 + $0x10] sm:$0xff] }
  0x50   :  { %616 = vmatprep.mubr.msk.f32.mxu0 %vm839_vm0, %v840_v1  ;;  %v682_v33 = vpack.c.bf16 %v271_v31, %v270_v30  ;;  %v273_v34 = vld [vmem:[#allocation6 + $0x18] sm:$0xff]  ;;  %v274_v36 = vld [vmem:[#allocation6 + $0x20] sm:$0xff]  ;;  %v275_v37 = vld [vmem:[#allocation6 + $0x28] sm:$0xff] }
  0x51   :  { %662 = vmatpush3.bf16.msra.mxu1 %v661_v11  ;;  %v685_v35 = vpack.c.bf16 %v273_v34, %v272_v32  ;;  %v688_v38 = vpack.c.bf16 %v275_v37, %v274_v36  ;;  %v276_v39 = vld [vmem:[#allocation6 + $0x30] sm:$0xff]  ;;  %v277_v40 = vld [vmem:[#allocation6 + $0x38] sm:$0xff]  ;;  %v278_v42 = vld [vmem:[#allocation6 + $0x40] sm:$0xff] }
  0x52   :  { %663 = vmatprep.subr.bf16.mxu1 %v838_v0  ;;  %683 = vmatpush3.bf16.msra.mxu0 %v682_v33  ;;  %v691_v41 = vpack.c.bf16 %v277_v40, %v276_v39  ;;  %v279_v43 = vld [vmem:[#allocation6 + $0x48] sm:$0xff]  ;;  %v280_v45 = vld [vmem:[#allocation6 + $0x50] sm:$0xff]  ;;  %v281_v46 = vld [vmem:[#allocation6 + $0x58] sm:$0xff] }
  0x53   :  { %684 = vmatprep.subr.bf16.mxu0 %v838_v0  ;;  %v694_v44 = vpack.c.bf16 %v279_v43, %v278_v42  ;;  %v697_v47 = vpack.c.bf16 %v281_v46, %v280_v45  ;;  %v282_v48 = vld [vmem:[#allocation6 + $0x60] sm:$0xff]  ;;  %v283_v49 = vld [vmem:[#allocation6 + $0x68] sm:$0xff]  ;;  %v284_v56 = vld [vmem:[#allocation6 + $0x70] sm:$0xff] }
  0x54   :  { %v700_v50 = vpack.c.bf16 %v283_v49, %v282_v48  ;;  %v481_v51 = vld [vmem:[%s1020_s2] ss:$0 sm:$0xff]  ;;  %v285_v57 = vld [vmem:[#allocation6 + $0x78] sm:$0xff]  ;;  %v365_v60 = vld [vmem:[#allocation7 + $0x8] sm:$0xff] }
  0x55   :  { %665 = vmatpush3.bf16.msra.mxu1 %v664_v14  ;;  %v703_v58 = vpack.c.bf16 %v285_v57, %v284_v56  ;;  %v364_v59 = vld [vmem:[#allocation7] sm:$0xff]  ;;  %v366_v61 = vld [vmem:[#allocation7 + $0x10] sm:$0xff]  ;;  %v367_v63 = vld [vmem:[#allocation7 + $0x18] sm:$0xff] }
  0x56   :  { %666 = vmatprep.subr.bf16.mxu1 %v838_v0  ;;  %686 = vmatpush3.bf16.msra.mxu0 %v685_v35  ;;  %v706_v62 = vpack.c.bf16 %v365_v60, %v364_v59  ;;  %v709_v2 = vpack.c.bf16 %v367_v63, %v366_v61  ;;  %v368_v3 = vld [vmem:[#allocation7 + $0x20] sm:$0xff]  ;;  %v369_v4 = vld [vmem:[#allocation7 + $0x28] sm:$0xff]  ;;  %v371_v6 = vld [vmem:[#allocation7 + $0x38] sm:$0xff] }
  0x57   :  { %687 = vmatprep.subr.bf16.mxu0 %v838_v0  ;;  %v712_v5 = vpack.c.bf16 %v369_v4, %v368_v3  ;;  %v372_v8 = vld [vmem:[#allocation7 + $0x40] sm:$0xff]  ;;  %v373_v9 = vld [vmem:[#allocation7 + $0x48] sm:$0xff]  ;;  %v374_v11 = vld [vmem:[#allocation7 + $0x50] sm:$0xff] }
  0x58   :  { %v718_v10 = vpack.c.bf16 %v373_v9, %v372_v8  ;;  %v375_v12 = vld [vmem:[#allocation7 + $0x58] sm:$0xff]  ;;  %v376_v14 = vld [vmem:[#allocation7 + $0x60] sm:$0xff]  ;;  %v377_v15 = vld [vmem:[#allocation7 + $0x68] sm:$0xff] }
  0x59   :  { %668 = vmatpush3.bf16.msra.mxu1 %v667_v17  ;;  %v721_v13 = vpack.c.bf16 %v375_v12, %v374_v11  ;;  %v724_v16 = vpack.c.bf16 %v377_v15, %v376_v14  ;;  %v483_v17 = vld [vmem:[%s1022_s4] ss:$0 sm:$0xff]  ;;  %v378_v22 = vld [vmem:[#allocation7 + $0x70] sm:$0xff] }
  0x5a   :  { %669 = vmatprep.subr.bf16.mxu1 %v838_v0  ;;  %689 = vmatpush3.bf16.msra.mxu0 %v688_v38  ;;  %v484_v25 = vld [vmem:[%s1024_s6] ss:$0 sm:$0xff] }
  0x5b   :  { %690 = vmatprep.subr.bf16.mxu0 %v838_v0  ;;  %v486_v31 = vld [vmem:[%s1027_s9] ss:$0 sm:$0xff] }
  0x5c   :  { %v487_v34 = vld [vmem:[%s1028_s10] ss:$0 sm:$0xff] }
  0x5d   :  { %671 = vmatpush3.bf16.msra.mxu1 %v670_v20 }
  0x5e   :  { %672 = vmatprep.subr.bf16.mxu1 %v838_v0  ;;  %692 = vmatpush3.bf16.msra.mxu0 %v691_v41 }
  0x5f   :  { %693 = vmatprep.subr.bf16.mxu0 %v838_v0 }
  0x61   :  { %674 = vmatpush3.bf16.msra.mxu1 %v673_v23  ;;  %v379_v23 = vld [vmem:[#allocation7 + $0x78] sm:$0xff] }
  0x62   :  { %675 = vmatprep.subr.bf16.mxu1 %v838_v0  ;;  %695 = vmatpush3.bf16.msra.mxu0 %v694_v44  ;;  %v727_v24 = vpack.c.bf16 %v379_v23, %v378_v22 }
  0x63   :  { %696 = vmatprep.subr.bf16.mxu0 %v838_v0 }
  0x65   :  { %677 = vmatpush3.bf16.msra.mxu1 %v676_v26 }
  0x66   :  { %678 = vmatprep.subr.bf16.mxu1 %v838_v0  ;;  %698 = vmatpush3.bf16.msra.mxu0 %v697_v47 }
  0x67   :  { %699 = vmatprep.subr.bf16.mxu0 %v838_v0 }
  0x69   :  { %680 = vmatpush3.bf16.msra.mxu1 %v679_v29  ;;  %v485_v29 = vld [vmem:[%s1026_s8] ss:$0 sm:$0xff] }
  0x6a   :  { %705 = vmatprep.subr.bf16.mxu1 %v838_v0  ;;  %701 = vmatpush3.bf16.msra.mxu0 %v700_v50 }
  0x6b   :  { %702 = vmatprep.subr.bf16.mxu0 %v838_v0 }
  0x6e   :  { %704 = vmatpush3.bf16.msra.mxu0 %v703_v58 }
 0x122   :  { %v171_v52 = vpop.f32.mrb[0].mxu0 }
 0x123   :  { %v172_v53 = vadd.f32 %v481_v51, %v171_v52  ;;  %v548_v54 = vpop.f32.mrb[1].mxu0 }
 0x125   :  { %v175_v55 = vmax.f32 %v172_v53, 0.0 }
 0x127   :  { %582 = vmatmul.mubr.f32.vlgmr.msra.gmra.mrb[0].mxu1 %v175_v55 }
 0x128   :  { %651 = vmatprep.mubr.msk.f32.mxu1 %vm839_vm0, %v840_v1  ;;  %707 = vmatpush3.bf16.msra.mxu1 %v706_v62  ;;  %v370_v1 = vld [vmem:[#allocation7 + $0x30] sm:$0xff] }
 0x129   :  { %708 = vmatprep.subr.bf16.mxu1 %v838_v0  ;;  %v715_v7 = vpack.c.bf16 %v371_v6, %v370_v1 }
 0x12c   :  { %710 = vmatpush3.bf16.msra.mxu1 %v709_v2 }
 0x12d   :  { %711 = vmatprep.subr.bf16.mxu1 %v838_v0 }
 0x130   :  { %713 = vmatpush3.bf16.msra.mxu1 %v712_v5 }
 0x131   :  { %714 = vmatprep.subr.bf16.mxu1 %v838_v0 }
 0x134   :  { %716 = vmatpush3.bf16.msra.mxu1 %v715_v7 }
 0x135   :  { %717 = vmatprep.subr.bf16.mxu1 %v838_v0 }
 0x138   :  { %719 = vmatpush3.bf16.msra.mxu1 %v718_v10 }
 0x139   :  { %720 = vmatprep.subr.bf16.mxu1 %v838_v0 }
 0x13c   :  { %722 = vmatpush3.bf16.msra.mxu1 %v721_v13 }
 0x13d   :  { %723 = vmatprep.subr.bf16.mxu1 %v838_v0 }
 0x140   :  { %725 = vmatpush3.bf16.msra.mxu1 %v724_v16 }
 0x141   :  { %726 = vmatprep.subr.bf16.mxu1 %v838_v0 }
 0x144   :  { %728 = vmatpush3.bf16.msra.mxu1 %v727_v24 }
 0x1fa   :  { %v265_v18 = vpop.f32.mrb[0].mxu1 }
 0x1fb   :  { %v266_v19 = vadd.f32 %v483_v17, %v265_v18  ;;  %v583_v20 = vpop.f32.mrb[1].mxu1 }
 0x1fd   :  { %v269_v21 = vmax.f32 %v266_v19, 0.0 }
 0x1ff   :  { %617 = vmatmul.mubr.f32.vlgmr.msra.gmra.mrb[2].mxu0 %v269_v21 }
 0x2d2   :  { %v359_v26 = vpop.f32.mrb[2].mxu0 }
 0x2d3   :  { %v360_v27 = vadd.f32 %v484_v25, %v359_v26  ;;  %v618_v0 = vpop.f32.mrb[3].mxu0 }
 0x2d5   :  { %v363_v28 = vmax.f32 %v360_v27, 0.0 }
 0x2d7   :  { %652 = vmatmul.mubr.f32.vlgmr.msra.gmra.mrb[2].mxu1 %v363_v28 }
 0x3aa   :  { %v453_v30 = vpop.f32.mrb[2].mxu1 }
 0x3ab   :  { %v454_v32 = vadd.f32 %v485_v29, %v453_v30  ;;  %v653_v33 = vpop.f32.mrb[3].mxu1 }
 0x3ad   :  { %v464_v35 = vmax.f32 %v454_v32, %v486_v31 }
 0x3af   :  { %v472_v36 = vmin.f32 %v464_v35, %v487_v34 }
 0x3b1   :  { %473 = vst [vmem:[%s1029_s11] sm:$0xff] %v472_v36 }
 0x3b2   :  { %478 = vsyncpa [#allocation3], 1 }
 0x3b3   :  { %479 = vsyncpa [#allocation5], 1 }
 0x3b4   :  { %480 = vsyncpa [#allocation8], 1 }

// kernel: gaussian_policy_forward.1
= control target key start
LH: loop header
LB: loop body
LE: loop exit
PB: predicated region body
PF: predicated region fallthrough
CT: control target
= control target key end

     0   :  { %16 = vsyncpa [#allocation3], 0  ;;  %s1018_s0 = inlined_call_operand.hbm [shape: f32[8,16], index: 0, kind: input, shape index: {}]   ;;  %s1019_s1 = inlined_call_operand.vmem [shape: f32[16,128], index: 1, kind: input, shape index: {}]   ;;  %s1020_s2 = inlined_call_operand.vmem [shape: f32[1,128], index: 2, kind: input, shape index: {}]   ;;  %s1021_s3 = inlined_call_operand.hbm [shape: f32[128,128], index: 3, kind: input, shape index: {}]   ;;  %s1022_s4 = inlined_call_operand.vmem [shape: f32[1,128], index: 4, kind: input, shape index: {}]   ;;  %s1023_s5 = inlined_call_operand.hbm [shape: f32[128,128], index: 5, kind: input, shape index: {}]   ;;  %s1024_s6 = inlined_call_operand.vmem [shape: f32[1,128], index: 6, kind: input, shape index: {}]   ;;  %s1025_s7 = inlined_call_operand.hbm [shape: f32[128,128], index: 7, kind: input, shape index: {}]   ;;  %s1026_s8 = inlined_call_operand.vmem [shape: f32[1,128], index: 8, kind: input, shape index: {}]   ;;  %s1027_s9 = inlined_call_operand.vmem [shape: f32[1,128], index: 9, kind: input, shape index: {}]   ;;  %s1028_s10 = inlined_call_operand.vmem [shape: f32[1,128], index: 10, kind: input, shape index: {}]   ;;  %s1029_s11 = inlined_call_operand.vmem [shape: f32[8,128], index: 11, kind: output, shape index: {}]  }
   0x1   :  { %17 = vsyncpa [#allocation5], 0 }
   0x2   :  { %18 = vsyncpa [#allocation8], 0  ;;  %s832_s17 = smov [#allocation4]   ;;  %s738_s21 = scalar_lea.hbm %s1021_s3, 2048 }
   0x3   :  { %s38_s18 = sshll.u32 %s832_s17, 4  ;;  %p739_p0 = scmp.ne.s32.totalorder %s1021_s3, %s738_s21  ;;  %s39_s18 = int_to_ptr.vmem [resolvable:$true] %s38_s18 }
   0x4   :  { %p742_p1 = scmp.lt.u32.totalorder %s738_s21, %s1021_s3 }
   0x6   :  { %p744_p2 = pnand %p742_p1, %p739_p0 }
   0x8   :  { %747 = shalt.err (!%p744_p2)
}
   0x9   :  { %s748_s26 = scalar_lea.vmem %s39_s18, 2048  ;;  %p753_p4 = scmp.lt.s32.totalorder %s39_s18, %s39_s18 }
   0xa   :  { %p749_p3 = scmp.ne.s32.totalorder %s39_s18, %s748_s26  ;;  %p754_p5 = scmp.lt.s32.totalorder %s748_s26, %s748_s26 }
   0xc   :  { %p755_p6 = por %p754_p5, %p753_p4 }
   0xe   :  { %p756_p7 = pnand %p755_p6, %p749_p3 }
  0x10   :  { %759 = shalt.err (!%p756_p7)
}
  0x11   :  { %s833_s27 = smov 128   ;;  %s834_s28 = smov 8  }
  0x12   :  { %44 = dma.hbm_to_vmem [thread:$0]  %s1021_s3, 2048, %s39_s18, [#allocation5], %s833_s27, %s833_s27, %s834_s28  }
  0x13   :  { %s835_s12 = smov [#allocation2]   ;;  %s836_s14 = smov [#allocation6]  }
  0x14   :  { %s25_s13 = sshll.u32 %s835_s12, 4  ;;  %s52_s15 = sshll.u32 %s836_s14, 4  ;;  %s26_s13 = int_to_ptr.vmem [resolvable:$true] %s25_s13  ;;  %s53_s15 = int_to_ptr.vmem [resolvable:$true] %s52_s15 }
  0x15   :  { %s760_s19 = scalar_lea.hbm %s1018_s0, 128 }
  0x16   :  { %p761_p8 = scmp.ne.s32.totalorder %s1018_s0, %s760_s19  ;;  %p764_p9 = scmp.lt.u32.totalorder %s760_s19, %s1018_s0 }
  0x18   :  { %p766_p10 = pnand %p764_p9, %p761_p8 }
  0x1a   :  { %769 = shalt.err (!%p766_p10)
}
  0x1b   :  { %s770_s3 = scalar_lea.vmem %s26_s13, 128  ;;  %p775_p12 = scmp.lt.s32.totalorder %s26_s13, %s26_s13 }
  0x1c   :  { %p771_p11 = scmp.ne.s32.totalorder %s26_s13, %s770_s3  ;;  %p776_p13 = scmp.lt.s32.totalorder %s770_s3, %s770_s3 }
  0x1e   :  { %p777_p0 = por %p776_p13, %p775_p12 }
  0x20   :  { %p778_p1 = pnand %p777_p0, %p771_p11 }
  0x22   :  { %781 = shalt.err (!%p778_p1)
}
  0x23   :  { %28 = dma.hbm_to_vmem [thread:$0]  %s1018_s0, 128, %s26_s13, [#allocation3]  }
  0x24   :  { %s782_s29 = scalar_lea.hbm %s1023_s5, 2048 }
  0x25   :  { %p783_p2 = scmp.ne.s32.totalorder %s1023_s5, %s782_s29  ;;  %p786_p3 = scmp.lt.u32.totalorder %s782_s29, %s1023_s5 }
  0x27   :  { %p788_p4 = pnand %p786_p3, %p783_p2 }
  0x29   :  { %791 = shalt.err (!%p788_p4)
}
  0x2a   :  { %s792_s17 = scalar_lea.vmem %s53_s15, 2048  ;;  %p797_p6 = scmp.lt.s32.totalorder %s53_s15, %s53_s15 }
  0x2b   :  { %p793_p5 = scmp.ne.s32.totalorder %s53_s15, %s792_s17  ;;  %p798_p7 = scmp.lt.s32.totalorder %s792_s17, %s792_s17 }
  0x2d   :  { %p799_p8 = por %p798_p7, %p797_p6 }
  0x2f   :  { %p800_p9 = pnand %p799_p8, %p793_p5 }
  0x31   :  { %803 = shalt.err (!%p800_p9)
}
  0x32   :  { %58 = dma.hbm_to_vmem [thread:$0]  %s1023_s5, 2048, %s53_s15, [#allocation5], %s833_s27, %s833_s27, %s834_s28  }
  0x33   :  { %s837_s19 = smov [#allocation7]   ;;  %s804_s23 = scalar_lea.hbm %s1025_s7, 2048 }
  0x34   :  { %s66_s20 = sshll.u32 %s837_s19, 4  ;;  %p805_p10 = scmp.ne.s32.totalorder %s1025_s7, %s804_s23  ;;  %s67_s20 = int_to_ptr.vmem [resolvable:$true] %s66_s20 }
  0x35   :  { %p808_p11 = scmp.lt.u32.totalorder %s804_s23, %s1025_s7 }
  0x37   :  { %p810_p12 = pnand %p808_p11, %p805_p10 }
  0x39   :  { %813 = shalt.err (!%p810_p12)
}
  0x3a   :  { %s814_s26 = scalar_lea.vmem %s67_s20, 2048  ;;  %p819_p0 = scmp.lt.s32.totalorder %s67_s20, %s67_s20 }
  0x3b   :  { %p815_p13 = scmp.ne.s32.totalorder %s67_s20, %s814_s26  ;;  %p820_p1 = scmp.lt.s32.totalorder %s814_s26, %s814_s26 }
  0x3d   :  { %p821_p2 = por %p820_p1, %p819_p0 }
  0x3f   :  { %p822_p3 = pnand %p821_p2, %p815_p13 }
  0x41   :  { %825 = shalt.err (!%p822_p3)
}
  0x42   :  { %72 = dma.hbm_to_vmem [thread:$0]  %s1025_s7, 2048, %s67_s20, [#allocation8], %s833_s27, %s833_s27, %s834_s28  }
  0x43   :  { %826 = dma.done.wait [#allocation3], 128  }
  0x44   :  { %827 = vsyncadd [#allocation3], 4294967168 }
  0x45   :  { %828 = dma.done.wait [#allocation5], 4096  }
  0x46   :  { %829 = vsyncadd [#allocation5], 4294963200 }
  0x47   :  { %830 = dma.done.wait [#allocation8], 2048  }
  0x48   :  { %831 = vsyncadd [#allocation8], 4294965248  ;;  %v838_v0 = vmov 0.0|0.0   ;;  %vm839_vm0 = vmmov 0   ;;  %v840_v1 = vmov 0.0   ;;  %v92_v2 = vld [vmem:[%s1019_s1] sm:$0xff] }
  0x49   :  { %654 = vmatprep.subr.bf16.mxu0 %v838_v0  ;;  %546 = vmatprep.mubr.msk.f32.mxu0 %vm839_vm0, %v840_v1  ;;  %v93_v3 = vld [vmem:[%s1019_s1 + $0x8] sm:$0xff]  ;;  %v176_v5 = vld [vmem:[#allocation4] sm:$0xff]  ;;  %v178_v7 = vld [vmem:[#allocation4 + $0x10] sm:$0xff]  ;;  %vm101_vm1 = vcmask 130048  }
  0x4a   :  { %657 = vmatprep.subr.bf16.mxu1 %v838_v0  ;;  %581 = vmatprep.mubr.msk.f32.mxu1 %vm839_vm0, %v840_v1  ;;  %v655_v4 = vpack.c.bf16 %v93_v3, %v92_v2  ;;  %v177_v6 = vld [vmem:[#allocation4 + $0x8] sm:$0xff]  ;;  %v179_v9 = vld [vmem:[#allocation4 + $0x18] sm:$0xff]  ;;  %v180_v12 = vld [vmem:[#allocation4 + $0x20] sm:$0xff] }
  0x4b   :  { %v658_v8 = vpack.c.bf16 %v177_v6, %v176_v5  ;;  %v91_v10 = vld [vmem:[#allocation2] sm:$0xff]  ;;  %v661_v11 = vpack.c.bf16 %v179_v9, %v178_v7  ;;  %v181_v13 = vld [vmem:[#allocation4 + $0x28] sm:$0xff]  ;;  %v182_v15 = vld [vmem:[#allocation4 + $0x30] sm:$0xff] }
  0x4c   :  { %656 = vmatpush3.bf16.msra.mxu0 %v655_v4  ;;  %v664_v14 = vpack.c.bf16 %v181_v13, %v180_v12  ;;  %v183_v16 = vld [vmem:[#allocation4 + $0x38] sm:$0xff]  ;;  %v184_v18 = vld [vmem:[#allocation4 + $0x40] sm:$0xff]  ;;  %v185_v19 = vld [vmem:[#allocation4 + $0x48] sm:$0xff] }
  0x4d   :  { %659 = vmatpush3.bf16.msra.mxu1 %v658_v8  ;;  %681 = vmatprep.subr.bf16.mxu0 %v838_v0  ;;  %v667_v17 = vpack.c.bf16 %v183_v16, %v182_v15  ;;  %v670_v20 = vpack.c.bf16 %v185_v19, %v184_v18  ;;  %v186_v21 = vld [vmem:[#allocation4 + $0x50] sm:$0xff]  ;;  %v187_v22 = vld [vmem:[#allocation4 + $0x58] sm:$0xff]  ;;  %v188_v24 = vld [vmem:[#allocation4 + $0x60] sm:$0xff] }
  0x4e   :  { %660 = vmatprep.subr.bf16.mxu1 %v838_v0  ;;  %v673_v23 = vpack.c.bf16 %v187_v22, %v186_v21  ;;  %v189_v25 = vld [vmem:[#allocation4 + $0x68] sm:$0xff]  ;;  %v190_v27 = vld [vmem:[#allocation4 + $0x70] sm:$0xff]  ;;  %v191_v28 = vld [vmem:[#allocation4 + $0x78] sm:$0xff] }
  0x4f   :  { %547 = vmatmul.mubr.msk.f32.vlgmr.msra.gmra.mrb[0].mxu0 %vm101_vm1, %v91_v10  ;;  %v676_v26 = vpack.c.bf16 %v189_v25, %v188_v24  ;;  %v679_v29 = vpack.c.bf16 %v191_v28, %v190_v27  ;;  %v270_v30 = vld [vmem:[#allocation6] sm:$0xff]  ;;  %v271_v31 = vld [vmem:[#allocation6 + $0x8] sm:$0xff]  ;;  %v272_v32 = vld [vmem:[#allocation6 + $0x10] sm:$0xff] }
  0x50   :  { %616 = vmatprep.mubr.msk.f32.mxu0 %vm839_vm0, %v840_v1  ;;  %v682_v33 = vpack.c.bf16 %v271_v31, %v270_v30  ;;  %v273_v34 = vld [vmem:[#allocation6 + $0x18] sm:$0xff]  ;;  %v274_v36 = vld [vmem:[#allocation6 + $0x20] sm:$0xff]  ;;  %v275_v37 = vld [vmem:[#allocation6 + $0x28] sm:$0xff] }
  0x51   :  { %662 = vmatpush3.bf16.msra.mxu1 %v661_v11  ;;  %v685_v35 = vpack.c.bf16 %v273_v34, %v272_v32  ;;  %v688_v38 = vpack.c.bf16 %v275_v37, %v274_v36  ;;  %v276_v39 = vld [vmem:[#allocation6 + $0x30] sm:$0xff]  ;;  %v277_v40 = vld [vmem:[#allocation6 + $0x38] sm:$0xff]  ;;  %v278_v42 = vld [vmem:[#allocation6 + $0x40] sm:$0xff] }
  0x52   :  { %663 = vmatprep.subr.bf16.mxu1 %v838_v0  ;;  %683 = vmatpush3.bf16.msra.mxu0 %v682_v33  ;;  %v691_v41 = vpack.c.bf16 %v277_v40, %v276_v39  ;;  %v279_v43 = vld [vmem:[#allocation6 + $0x48] sm:$0xff]  ;;  %v280_v45 = vld [vmem:[#allocation6 + $0x50] sm:$0xff]  ;;  %v281_v46 = vld [vmem:[#allocation6 + $0x58] sm:$0xff] }
  0x53   :  { %684 = vmatprep.subr.bf16.mxu0 %v838_v0  ;;  %v694_v44 = vpack.c.bf16 %v279_v43, %v278_v42  ;;  %v697_v47 = vpack.c.bf16 %v281_v46, %v280_v45  ;;  %v282_v48 = vld [vmem:[#allocation6 + $0x60] sm:$0xff]  ;;  %v283_v49 = vld [vmem:[#allocation6 + $0x68] sm:$0xff]  ;;  %v284_v56 = vld [vmem:[#allocation6 + $0x70] sm:$0xff] }
  0x54   :  { %v700_v50 = vpack.c.bf16 %v283_v49, %v282_v48  ;;  %v481_v51 = vld [vmem:[%s1020_s2] ss:$0 sm:$0xff]  ;;  %v285_v57 = vld [vmem:[#allocation6 + $0x78] sm:$0xff]  ;;  %v365_v60 = vld [vmem:[#allocation7 + $0x8] sm:$0xff] }
  0x55   :  { %665 = vmatpush3.bf16.msra.mxu1 %v664_v14  ;;  %v703_v58 = vpack.c.bf16 %v285_v57, %v284_v56  ;;  %v364_v59 = vld [vmem:[#allocation7] sm:$0xff]  ;;  %v366_v61 = vld [vmem:[#allocation7 + $0x10] sm:$0xff]  ;;  %v367_v63 = vld [vmem:[#allocation7 + $0x18] sm:$0xff] }
  0x56   :  { %666 = vmatprep.subr.bf16.mxu1 %v838_v0  ;;  %686 = vmatpush3.bf16.msra.mxu0 %v685_v35  ;;  %v706_v62 = vpack.c.bf16 %v365_v60, %v364_v59  ;;  %v709_v2 = vpack.c.bf16 %v367_v63, %v366_v61  ;;  %v368_v3 = vld [vmem:[#allocation7 + $0x20] sm:$0xff]  ;;  %v369_v4 = vld [vmem:[#allocation7 + $0x28] sm:$0xff]  ;;  %v371_v6 = vld [vmem:[#allocation7 + $0x38] sm:$0xff] }
  0x57   :  { %687 = vmatprep.subr.bf16.mxu0 %v838_v0  ;;  %v712_v5 = vpack.c.bf16 %v369_v4, %v368_v3  ;;  %v372_v8 = vld [vmem:[#allocation7 + $0x40] sm:$0xff]  ;;  %v373_v9 = vld [vmem:[#allocation7 + $0x48] sm:$0xff]  ;;  %v374_v11 = vld [vmem:[#allocation7 + $0x50] sm:$0xff] }
  0x58   :  { %v718_v10 = vpack.c.bf16 %v373_v9, %v372_v8  ;;  %v375_v12 = vld [vmem:[#allocation7 + $0x58] sm:$0xff]  ;;  %v376_v14 = vld [vmem:[#allocation7 + $0x60] sm:$0xff]  ;;  %v377_v15 = vld [vmem:[#allocation7 + $0x68] sm:$0xff] }
  0x59   :  { %668 = vmatpush3.bf16.msra.mxu1 %v667_v17  ;;  %v721_v13 = vpack.c.bf16 %v375_v12, %v374_v11  ;;  %v724_v16 = vpack.c.bf16 %v377_v15, %v376_v14  ;;  %v483_v17 = vld [vmem:[%s1022_s4] ss:$0 sm:$0xff]  ;;  %v378_v22 = vld [vmem:[#allocation7 + $0x70] sm:$0xff] }
  0x5a   :  { %669 = vmatprep.subr.bf16.mxu1 %v838_v0  ;;  %689 = vmatpush3.bf16.msra.mxu0 %v688_v38  ;;  %v484_v25 = vld [vmem:[%s1024_s6] ss:$0 sm:$0xff] }
  0x5b   :  { %690 = vmatprep.subr.bf16.mxu0 %v838_v0  ;;  %v486_v31 = vld [vmem:[%s1027_s9] ss:$0 sm:$0xff] }
  0x5c   :  { %v487_v34 = vld [vmem:[%s1028_s10] ss:$0 sm:$0xff] }
  0x5d   :  { %671 = vmatpush3.bf16.msra.mxu1 %v670_v20 }
  0x5e   :  { %672 = vmatprep.subr.bf16.mxu1 %v838_v0  ;;  %692 = vmatpush3.bf16.msra.mxu0 %v691_v41 }
  0x5f   :  { %693 = vmatprep.subr.bf16.mxu0 %v838_v0 }
  0x61   :  { %674 = vmatpush3.bf16.msra.mxu1 %v673_v23  ;;  %v379_v23 = vld [vmem:[#allocation7 + $0x78] sm:$0xff] }
  0x62   :  { %675 = vmatprep.subr.bf16.mxu1 %v838_v0  ;;  %695 = vmatpush3.bf16.msra.mxu0 %v694_v44  ;;  %v727_v24 = vpack.c.bf16 %v379_v23, %v378_v22 }
  0x63   :  { %696 = vmatprep.subr.bf16.mxu0 %v838_v0 }
  0x65   :  { %677 = vmatpush3.bf16.msra.mxu1 %v676_v26 }
  0x66   :  { %678 = vmatprep.subr.bf16.mxu1 %v838_v0  ;;  %698 = vmatpush3.bf16.msra.mxu0 %v697_v47 }
  0x67   :  { %699 = vmatprep.subr.bf16.mxu0 %v838_v0 }
  0x69   :  { %680 = vmatpush3.bf16.msra.mxu1 %v679_v29  ;;  %v485_v29 = vld [vmem:[%s1026_s8] ss:$0 sm:$0xff] }
  0x6a   :  { %705 = vmatprep.subr.bf16.mxu1 %v838_v0  ;;  %701 = vmatpush3.bf16.msra.mxu0 %v700_v50 }
  0x6b   :  { %702 = vmatprep.subr.bf16.mxu0 %v838_v0 }
  0x6e   :  { %704 = vmatpush3.bf16.msra.mxu0 %v703_v58 }
 0x122   :  { %v171_v52 = vpop.f32.mrb[0].mxu0 }
 0x123   :  { %v172_v53 = vadd.f32 %v481_v51, %v171_v52  ;;  %v548_v54 = vpop.f32.mrb[1].mxu0 }
 0x125   :  { %v175_v55 = vmax.f32 %v172_v53, 0.0 }
 0x127   :  { %582 = vmatmul.mubr.f32.vlgmr.msra.gmra.mrb[0].mxu1 %v175_v55 }
 0x128   :  { %651 = vmatprep.mubr.msk.f32.mxu1 %vm839_vm0, %v840_v1  ;;  %707 = vmatpush3.bf16.msra.mxu1 %v706_v62  ;;  %v370_v1 = vld [vmem:[#allocation7 + $0x30] sm:$0xff] }
 0x129   :  { %708 = vmatprep.subr.bf16.mxu1 %v838_v0  ;;  %v715_v7 = vpack.c.bf16 %v371_v6, %v370_v1 }
 0x12c   :  { %710 = vmatpush3.bf16.msra.mxu1 %v709_v2 }
 0x12d   :  { %711 = vmatprep.subr.bf16.mxu1 %v838_v0 }
 0x130   :  { %713 = vmatpush3.bf16.msra.mxu1 %v712_v5 }
 0x131   :  { %714 = vmatprep.subr.bf16.mxu1 %v838_v0 }
 0x134   :  { %716 = vmatpush3.bf16.msra.mxu1 %v715_v7 }
 0x135   :  { %717 = vmatprep.subr.bf16.mxu1 %v838_v0 }
 0x138   :  { %719 = vmatpush3.bf16.msra.mxu1 %v718_v10 }
 0x139   :  { %720 = vmatprep.subr.bf16.mxu1 %v838_v0 }
 0x13c   :  { %722 = vmatpush3.bf16.msra.mxu1 %v721_v13 }
 0x13d   :  { %723 = vmatprep.subr.bf16.mxu1 %v838_v0 }
 0x140   :  { %725 = vmatpush3.bf16.msra.mxu1 %v724_v16 }
 0x141   :  { %726 = vmatprep.subr.bf16.mxu1 %v838_v0 }
 0x144   :  { %728 = vmatpush3.bf16.msra.mxu1 %v727_v24 }
 0x1fa   :  { %v265_v18 = vpop.f32.mrb[0].mxu1 }
 0x1fb   :  { %v266_v19 = vadd.f32 %v483_v17, %v265_v18  ;;  %v583_v20 = vpop.f32.mrb[1].mxu1 }
 0x1fd   :  { %v269_v21 = vmax.f32 %v266_v19, 0.0 }
 0x1ff   :  { %617 = vmatmul.mubr.f32.vlgmr.msra.gmra.mrb[2].mxu0 %v269_v21 }
 0x2d2   :  { %v359_v26 = vpop.f32.mrb[2].mxu0 }
 0x2d3   :  { %v360_v27 = vadd.f32 %v484_v25, %v359_v26  ;;  %v618_v0 = vpop.f32.mrb[3].mxu0 }
 0x2d5   :  { %v363_v28 = vmax.f32 %v360_v27, 0.0 }
 0x2d7   :  { %652 = vmatmul.mubr.f32.vlgmr.msra.gmra.mrb[2].mxu1 %v363_v28 }
 0x3aa   :  { %v453_v30 = vpop.f32.mrb[2].mxu1 }
 0x3ab   :  { %v454_v32 = vadd.f32 %v485_v29, %v453_v30  ;;  %v653_v33 = vpop.f32.mrb[3].mxu1 }
 0x3ad   :  { %v464_v35 = vmax.f32 %v454_v32, %v486_v31 }
 0x3af   :  { %v472_v36 = vmin.f32 %v464_v35, %v487_v34 }
 0x3b1   :  { %473 = vst [vmem:[%s1029_s11] sm:$0xff] %v472_v36 }
 0x3b2   :  { %478 = vsyncpa [#allocation3], 1 }
 0x3b3   :  { %479 = vsyncpa [#allocation5], 1 }
 0x3b4   :  { %480 = vsyncpa [#allocation8], 1 }

</bundles_post_ra>
